<compile_context>
chip_gen: v5e
topology: v5e:2x2
jax: 0.10.0
libtpu: 0.0.40
codegen_flags: <defaults>
</compile_context>

<pallas_src>
import jax
import jax.numpy as jnp
from jax import lax
from jax.experimental import pallas as pl
from jax.experimental.pallas import tpu as pltpu


def embedding_kernel(x_ids_smem,    # (B, S) int32, SMEM (scalar prefetch)
                     seg_ref,       # (1, TS, 1) int32 VMEM block (segment ids)
                     tok_hbm,       # (V, D) token table, left in HBM (pl.ANY)
                     pos_ref,       # (TS, D) position-table tile for this seq tile
                     segt_ref,      # (NS, D) segment table (tiny, VMEM resident)
                     gamma_ref,     # (1, D) LayerNorm gamma
                     beta_ref,      # (1, D) LayerNorm beta
                     o_ref,         # (1, TS, D) output block
                     gather_buf,    # VMEM scratch (TS, D): gathered token rows
                     sem):          # DMA semaphore pool, shape (NSEM,)
    b = pl.program_id(0)
    st = pl.program_id(1)
    TS, D = gather_buf.shape
    NS = segt_ref.shape[0]
    NSEM = sem.shape[0]
    base = st * TS

    # ---- token embedding: row-gather DMAs from the HBM-resident table -------------
    # Semaphore slots are reused modulo NSEM so the semaphore count stays bounded no
    # matter how large the sequence tile is; up to NSEM row copies stay in flight.
    @pl.loop(0, TS)
    def _issue(i):
        slot = lax.rem(i, NSEM)

        @pl.when(i >= NSEM)
        def _():
            # free this slot: drain the copy issued NSEM iterations ago
            pltpu.make_async_copy(tok_hbm.at[pl.ds(0, 1)],
                                  gather_buf.at[pl.ds(i - NSEM, 1)],
                                  sem.at[slot]).wait()

        tok_id = x_ids_smem[b, base + i]
        pltpu.make_async_copy(tok_hbm.at[pl.ds(tok_id, 1)],
                              gather_buf.at[pl.ds(i, 1)],
                              sem.at[slot]).start()

    # ---- work independent of the gathered rows (hides the gather-DMA latency) -----
    # position tile (contiguous slice) + segment embedding as an additive VPU select.
    sids = seg_ref[0, :, :]                                   # (TS, 1) int32
    pos_plus_seg = pos_ref[...].astype(jnp.float32)           # (TS, D)
    for s_id in range(NS):                                    # NS is a static int
        pos_plus_seg = pos_plus_seg + jnp.where(
            sids == s_id,
            segt_ref[s_id:s_id + 1, :].astype(jnp.float32),
            0.0)

    # ---- drain the remaining in-flight token-row copies ----------------------------
    tail = max(TS - NSEM, 0)

    @pl.loop(tail, TS)
    def _wait(i):
        slot = lax.rem(i, NSEM)
        pltpu.make_async_copy(tok_hbm.at[pl.ds(0, 1)],
                              gather_buf.at[pl.ds(i, 1)],
                              sem.at[slot]).wait()

    emb = gather_buf[...].astype(jnp.float32) + pos_plus_seg   # (TS, D)

    # ---- LayerNorm over D (eps = 1e-5, PyTorch default), elementwise affine -------
    mean = jnp.mean(emb, axis=-1, keepdims=True)
    cent = emb - mean
    var = jnp.mean(cent * cent, axis=-1, keepdims=True)
    normed = cent * lax.rsqrt(var + 1e-5)
    out = normed * gamma_ref[...] + beta_ref[...]

    o_ref[...] = out[None, :, :].astype(o_ref.dtype)


def _pick_seq_tile(S, target=256):
    """Largest seq tile <= target that divides S (and keeps sublane alignment)."""
    if S <= target:
        return S
    for ts in range(target, 7, -1):
        if S % ts == 0 and ts % 8 == 0:
            return ts
    return S


def embedding_forward(x, seg, tok_table, pos_table, seg_table, gamma, beta):
    B, S = x.shape
    V, D = tok_table.shape
    maxlen = pos_table.shape[0]
    NS = seg_table.shape[0]
    assert S <= maxlen, "sequence length exceeds position table"
    # TODO(synk): token ids are assumed in-range (DMA gather has no OOB check).

    TS = _pick_seq_tile(S)
    n_stiles = S // TS
    NSEM = min(TS, 16)                           # bounded in-flight gather DMAs

    seg3 = seg.reshape(B, S, 1).astype(jnp.int32)
    gamma2 = gamma.reshape(1, D)
    beta2 = beta.reshape(1, D)

    grid_spec = pltpu.PrefetchScalarGridSpec(
        num_scalar_prefetch=1,                   # token ids -> SMEM for DMA addressing
        grid=(B, n_stiles),
        in_specs=[
            pl.BlockSpec((1, TS, 1), lambda b, s, ids: (b, s, 0)),   # segment ids
            pl.BlockSpec(memory_space=pl.ANY),                        # token table in HBM
            pl.BlockSpec((TS, D), lambda b, s, ids: (s, 0)),          # pos table tile
            pl.BlockSpec((NS, D), lambda b, s, ids: (0, 0)),          # segment table
            pl.BlockSpec((1, D), lambda b, s, ids: (0, 0)),           # gamma
            pl.BlockSpec((1, D), lambda b, s, ids: (0, 0)),           # beta
        ],
        out_specs=pl.BlockSpec((1, TS, D), lambda b, s, ids: (b, s, 0)),
        scratch_shapes=[
            pltpu.VMEM((TS, D), tok_table.dtype),   # gathered token rows
            pltpu.SemaphoreType.DMA((NSEM,)),       # reusable DMA semaphore pool
        ],
    )

    return pl.pallas_call(
        embedding_kernel,
        out_shape=jax.ShapeDtypeStruct((B, S, D), jnp.float32),
        grid_spec=grid_spec,
        compiler_params=pltpu.CompilerParams(
            dimension_semantics=("parallel", "parallel")),
    )(x.astype(jnp.int32), seg3, tok_table, pos_table, seg_table, gamma2, beta2)


def embedding_reference(x, seg, tok_table, pos_table, seg_table, gamma, beta):
    B, S = x.shape
    emb = (tok_table[x]
           + pos_table[jnp.arange(S)][None, :, :]
           + seg_table[seg])
    mean = jnp.mean(emb, axis=-1, keepdims=True)
    var = jnp.mean((emb - mean) ** 2, axis=-1, keepdims=True)
    return (emb - mean) * lax.rsqrt(var + 1e-5) * gamma + beta


if __name__ == "__main__":
    # module hyperparameters (small, consistent with the forward pass)
    vocab_size, maxlen, emb_dim, n_segments = 32, 16, 32, 2
    B, S = 2, 8

    key = jax.random.PRNGKey(0)
    k_tok, k_pos, k_seg, k_x, k_s = jax.random.split(key, 5)

    # nn.Embedding default init: N(0, 1); LayerNorm: gamma=1, beta=0
    tok_table = jax.random.normal(k_tok, (vocab_size, emb_dim), jnp.float32)
    pos_table = jax.random.normal(k_pos, (maxlen, emb_dim), jnp.float32)
    seg_table = jax.random.normal(k_seg, (n_segments, emb_dim), jnp.float32)
    gamma = jnp.ones((emb_dim,), jnp.float32)
    beta = jnp.zeros((emb_dim,), jnp.float32)

    x = jax.random.randint(k_x, (B, S), 0, vocab_size, dtype=jnp.int32)
    seg = jax.random.randint(k_s, (B, S), 0, n_segments, dtype=jnp.int32)

    out = embedding_forward(x, seg, tok_table, pos_table, seg_table, gamma, beta)
    out = jax.block_until_ready(out)

    ref = embedding_reference(x, seg, tok_table, pos_table, seg_table, gamma, beta)
    assert out.shape == (B, S, emb_dim)
    assert jnp.allclose(out, ref, atol=1e-4, rtol=1e-4)

    print("KERNEL_OK")
</pallas_src>

<mosaic_0001>
module attributes {stable_mosaic.version = 11 : i64} {
  func.func @embedding_kernel(%arg0: i32, %arg1: i32, %arg2: memref<2x8xi32, #tpu.memory_space<smem>>, %arg3: memref<1x8x1xi32, #tpu.memory_space<vmem>>, %arg4: memref<32x32xf32, #tpu.memory_space<any>>, %arg5: memref<8x32xf32, #tpu.memory_space<vmem>>, %arg6: memref<2x32xf32, #tpu.memory_space<vmem>>, %arg7: memref<1x32xf32, #tpu.memory_space<vmem>>, %arg8: memref<1x32xf32, #tpu.memory_space<vmem>>, %arg9: memref<1x8x32xf32, #tpu.memory_space<vmem>>, %arg10: memref<8x32xf32, #tpu.memory_space<vmem>>, %arg11: memref<8x!tpu.dma_semaphore, #tpu.memory_space<semaphore_mem>>) attributes {dimension_semantics = [#tpu.dimension_semantics<parallel>, #tpu.dimension_semantics<parallel>], iteration_bounds = array<i64: 2, 1>, scalar_prefetch = 1 : i64, scratch_operands = 2 : i64, tpu.core_type = #tpu.core_type<tc>, window_params = [{transform_indices = @transform_0, window_bounds = array<i64: 1, 8, 1>}, {}, {transform_indices = @transform_2, window_bounds = array<i64: 8, 32>}, {pipeline_mode = #tpu.pipeline_mode<synchronous>, transform_indices = @transform_3, window_bounds = array<i64: 2, 32>}, {pipeline_mode = #tpu.pipeline_mode<synchronous>, transform_indices = @transform_4, window_bounds = array<i64: 1, 32>}, {pipeline_mode = #tpu.pipeline_mode<synchronous>, transform_indices = @transform_5, window_bounds = array<i64: 1, 32>}, {transform_indices = @transform_6, window_bounds = array<i64: 1, 8, 32>}]} {
    %c8_i32 = arith.constant 8 : i32
    %0 = arith.muli %arg1, %c8_i32 : i32
    %c0_i32 = arith.constant 0 : i32
    %c8_i32_0 = arith.constant 8 : i32
    %1 = arith.addi %c0_i32, %c8_i32_0 : i32
    %c1_i32 = arith.constant 1 : i32
    scf.for %arg12 = %c0_i32 to %1 step %c1_i32  : i32 {
      %c1_i32_30 = arith.constant 1 : i32
      %52 = arith.muli %arg12, %c1_i32_30 : i32
      %c0_i32_31 = arith.constant 0 : i32
      %53 = arith.addi %c0_i32_31, %52 : i32
      %c8_i32_32 = arith.constant 8 : i32
      %54 = arith.remsi %53, %c8_i32_32 : i32
      %c8_i32_33 = arith.constant 8 : i32
      %55 = arith.cmpi sge, %53, %c8_i32_33 : i32
      %56 = arith.extui %55 : i1 to i32
      %c0_i32_34 = arith.constant 0 : i32
      %57 = arith.cmpi ne, %56, %c0_i32_34 : i32
      scf.if %57 {
        %c8_i32_37 = arith.constant 8 : i32
        %66 = arith.subi %53, %c8_i32_37 : i32
        %c0_i32_38 = arith.constant 0 : i32
        %c0_i32_39 = arith.constant 0 : i32
        %67 = tpu.memref_slice %arg4[%c0_i32_38, %c0_i32_39] : memref<32x32xf32, #tpu.memory_space<any>> -> memref<1x32xf32, #tpu.memory_space<any>>
        %c0_i32_40 = arith.constant 0 : i32
        %68 = tpu.memref_slice %arg10[%66, %c0_i32_40] : memref<8x32xf32, #tpu.memory_space<vmem>> -> memref<1x32xf32, #tpu.memory_space<vmem>>
        %69 = tpu.memref_slice %arg11[%54] : memref<8x!tpu.dma_semaphore, #tpu.memory_space<semaphore_mem>> -> memref<1x!tpu.dma_semaphore, #tpu.memory_space<semaphore_mem>>
        %70 = tpu.memref_squeeze %69 : memref<1x!tpu.dma_semaphore, #tpu.memory_space<semaphore_mem>> -> memref<!tpu.dma_semaphore, #tpu.memory_space<semaphore_mem>>
        tpu.wait_dma2 semaphore(%70 : memref<!tpu.dma_semaphore, #tpu.memory_space<semaphore_mem>>) src(%67 : memref<1x32xf32, #tpu.memory_space<any>>) dst(%68 : memref<1x32xf32, #tpu.memory_space<vmem>>)
      } else {
      }
      %58 = arith.addi %0, %53 : i32
      %59 = arith.index_cast %arg0 : i32 to index
      %60 = arith.index_cast %58 : i32 to index
      %61 = memref.load %arg2[%59, %60] : memref<2x8xi32, #tpu.memory_space<smem>>
      %c0_i32_35 = arith.constant 0 : i32
      %62 = tpu.memref_slice %arg4[%61, %c0_i32_35] : memref<32x32xf32, #tpu.memory_space<any>> -> memref<1x32xf32, #tpu.memory_space<any>>
      %c0_i32_36 = arith.constant 0 : i32
      %63 = tpu.memref_slice %arg10[%53, %c0_i32_36] : memref<8x32xf32, #tpu.memory_space<vmem>> -> memref<1x32xf32, #tpu.memory_space<vmem>>
      %64 = tpu.memref_slice %arg11[%54] : memref<8x!tpu.dma_semaphore, #tpu.memory_space<semaphore_mem>> -> memref<1x!tpu.dma_semaphore, #tpu.memory_space<semaphore_mem>>
      %65 = tpu.memref_squeeze %64 : memref<1x!tpu.dma_semaphore, #tpu.memory_space<semaphore_mem>> -> memref<!tpu.dma_semaphore, #tpu.memory_space<semaphore_mem>>
      tpu.enqueue_dma source(%62 : memref<1x32xf32, #tpu.memory_space<any>>) target(%63 : memref<1x32xf32, #tpu.memory_space<vmem>>) target_semaphore(%65 : memref<!tpu.dma_semaphore, #tpu.memory_space<semaphore_mem>>)
    }
    %c8_i32_1 = arith.constant 8 : i32
    %c0 = arith.constant 0 : index
    %c0_2 = arith.constant 0 : index
    %c0_3 = arith.constant 0 : index
    %2 = vector.load %arg3[%c0, %c0_2, %c0_3] : memref<1x8x1xi32, #tpu.memory_space<vmem>>, vector<1x8x1xi32>
    %3 = vector.shape_cast %2 : vector<1x8x1xi32> to vector<8x1xi32>
    %c0_4 = arith.constant 0 : index
    %c0_5 = arith.constant 0 : index
    %4 = vector.load %arg5[%c0_4, %c0_5] : memref<8x32xf32, #tpu.memory_space<vmem>>, vector<8x32xf32>
    %c0_i32_6 = arith.constant 0 : i32
    %5 = vector.broadcast %c0_i32_6 : i32 to vector<8x1xi32>
    %6 = arith.cmpi eq, %3, %5 : vector<8x1xi32>
    %c0_7 = arith.constant 0 : index
    %c0_8 = arith.constant 0 : index
    %7 = vector.load %arg6[%c0_7, %c0_8] : memref<2x32xf32, #tpu.memory_space<vmem>>, vector<1x32xf32>
    %cst = arith.constant 0.000000e+00 : f32
    %8 = vector.shape_cast %6 : vector<8x1xi1> to vector<8x1xi1>
    %9 = vector.broadcast %8 : vector<8x1xi1> to vector<8x32xi1>
    %10 = vector.shape_cast %7 : vector<1x32xf32> to vector<1x32xf32>
    %11 = vector.broadcast %10 : vector<1x32xf32> to vector<8x32xf32>
    %12 = vector.broadcast %cst : f32 to vector<8x32xf32>
    %13 = arith.select %9, %11, %12 : vector<8x32xi1>, vector<8x32xf32>
    %14 = arith.addf %4, %13 : vector<8x32xf32>
    %c1_i32_9 = arith.constant 1 : i32
    %15 = vector.broadcast %c1_i32_9 : i32 to vector<8x1xi32>
    %16 = arith.cmpi eq, %3, %15 : vector<8x1xi32>
    %c1 = arith.constant 1 : index
    %c0_10 = arith.constant 0 : index
    %17 = vector.load %arg6[%c1, %c0_10] : memref<2x32xf32, #tpu.memory_space<vmem>>, vector<1x32xf32>
    %cst_11 = arith.constant 0.000000e+00 : f32
    %18 = vector.shape_cast %16 : vector<8x1xi1> to vector<8x1xi1>
    %19 = vector.broadcast %18 : vector<8x1xi1> to vector<8x32xi1>
    %20 = vector.shape_cast %17 : vector<1x32xf32> to vector<1x32xf32>
    %21 = vector.broadcast %20 : vector<1x32xf32> to vector<8x32xf32>
    %22 = vector.broadcast %cst_11 : f32 to vector<8x32xf32>
    %23 = arith.select %19, %21, %22 : vector<8x32xi1>, vector<8x32xf32>
    %24 = arith.addf %14, %23 : vector<8x32xf32>
    %c0_i32_12 = arith.constant 0 : i32
    %c8_i32_13 = arith.constant 8 : i32
    %25 = arith.addi %c0_i32_12, %c8_i32_13 : i32
    %c1_i32_14 = arith.constant 1 : i32
    scf.for %arg12 = %c0_i32_12 to %25 step %c1_i32_14  : i32 {
      %c1_i32_30 = arith.constant 1 : i32
      %52 = arith.muli %arg12, %c1_i32_30 : i32
      %c0_i32_31 = arith.constant 0 : i32
      %53 = arith.addi %c0_i32_31, %52 : i32
      %c8_i32_32 = arith.constant 8 : i32
      %54 = arith.remsi %53, %c8_i32_32 : i32
      %c0_i32_33 = arith.constant 0 : i32
      %c0_i32_34 = arith.constant 0 : i32
      %55 = tpu.memref_slice %arg4[%c0_i32_33, %c0_i32_34] : memref<32x32xf32, #tpu.memory_space<any>> -> memref<1x32xf32, #tpu.memory_space<any>>
      %c0_i32_35 = arith.constant 0 : i32
      %56 = tpu.memref_slice %arg10[%53, %c0_i32_35] : memref<8x32xf32, #tpu.memory_space<vmem>> -> memref<1x32xf32, #tpu.memory_space<vmem>>
      %57 = tpu.memref_slice %arg11[%54] : memref<8x!tpu.dma_semaphore, #tpu.memory_space<semaphore_mem>> -> memref<1x!tpu.dma_semaphore, #tpu.memory_space<semaphore_mem>>
      %58 = tpu.memref_squeeze %57 : memref<1x!tpu.dma_semaphore, #tpu.memory_space<semaphore_mem>> -> memref<!tpu.dma_semaphore, #tpu.memory_space<semaphore_mem>>
      tpu.wait_dma2 semaphore(%58 : memref<!tpu.dma_semaphore, #tpu.memory_space<semaphore_mem>>) src(%55 : memref<1x32xf32, #tpu.memory_space<any>>) dst(%56 : memref<1x32xf32, #tpu.memory_space<vmem>>)
    }
    %c8_i32_15 = arith.constant 8 : i32
    %c0_16 = arith.constant 0 : index
    %c0_17 = arith.constant 0 : index
    %26 = vector.load %arg10[%c0_16, %c0_17] : memref<8x32xf32, #tpu.memory_space<vmem>>, vector<8x32xf32>
    %27 = arith.addf %26, %24 : vector<8x32xf32>
    %cst_18 = arith.constant dense<0.000000e+00> : vector<8xf32>
    %28 = vector.multi_reduction <add>, %27, %cst_18 [1] : vector<8x32xf32> to vector<8xf32>
    %29 = vector.shape_cast %28 : vector<8xf32> to vector<8x1xf32>
    %cst_19 = arith.constant 3.200000e+01 : f32
    %30 = vector.broadcast %cst_19 : f32 to vector<8x1xf32>
    %31 = arith.divf %29, %30 : vector<8x1xf32>
    %32 = vector.broadcast %31 : vector<8x1xf32> to vector<8x32xf32>
    %33 = arith.subf %27, %32 : vector<8x32xf32>
    %34 = arith.mulf %33, %33 : vector<8x32xf32>
    %cst_20 = arith.constant dense<0.000000e+00> : vector<8xf32>
    %35 = vector.multi_reduction <add>, %34, %cst_20 [1] : vector<8x32xf32> to vector<8xf32>
    %36 = vector.shape_cast %35 : vector<8xf32> to vector<8x1xf32>
    %cst_21 = arith.constant 3.200000e+01 : f32
    %37 = vector.broadcast %cst_21 : f32 to vector<8x1xf32>
    %38 = arith.divf %36, %37 : vector<8x1xf32>
    %cst_22 = arith.constant 9.99999974E-6 : f32
    %39 = vector.broadcast %cst_22 : f32 to vector<8x1xf32>
    %40 = arith.addf %38, %39 : vector<8x1xf32>
    %41 = math.rsqrt %40 : vector<8x1xf32>
    %42 = vector.broadcast %41 : vector<8x1xf32> to vector<8x32xf32>
    %43 = arith.mulf %33, %42 : vector<8x32xf32>
    %c0_23 = arith.constant 0 : index
    %c0_24 = arith.constant 0 : index
    %44 = vector.load %arg7[%c0_23, %c0_24] : memref<1x32xf32, #tpu.memory_space<vmem>>, vector<1x32xf32>
    %45 = vector.broadcast %44 : vector<1x32xf32> to vector<8x32xf32>
    %46 = arith.mulf %43, %45 : vector<8x32xf32>
    %c0_25 = arith.constant 0 : index
    %c0_26 = arith.constant 0 : index
    %47 = vector.load %arg8[%c0_25, %c0_26] : memref<1x32xf32, #tpu.memory_space<vmem>>, vector<1x32xf32>
    %48 = vector.broadcast %47 : vector<1x32xf32> to vector<8x32xf32>
    %49 = arith.addf %46, %48 : vector<8x32xf32>
    %50 = vector.shape_cast %49 : vector<8x32xf32> to vector<1x8x32xf32>
    %c0_27 = arith.constant 0 : index
    %c0_28 = arith.constant 0 : index
    %c0_29 = arith.constant 0 : index
    %51 = vector.load %arg9[%c0_27, %c0_28, %c0_29] : memref<1x8x32xf32, #tpu.memory_space<vmem>>, vector<1x8x32xf32>
    tpu.vector_store %arg9[%c0_27, %c0_28, %c0_29], %50 {strides = array<i32>} : memref<1x8x32xf32, #tpu.memory_space<vmem>>, vector<1x8x32xf32>,
    return
  }
  func.func @transform_0(%arg0: i32, %arg1: i32, %arg2: memref<2x8xi32, #tpu.memory_space<smem>>) -> (i32, i32, i32) {
    %c0_i32 = arith.constant 0 : i32
    %c0_i32_0 = arith.constant 0 : i32
    return %arg0, %arg1, %c0_i32 : i32, i32, i32
  }
  func.func @transform_2(%arg0: i32, %arg1: i32, %arg2: memref<2x8xi32, #tpu.memory_space<smem>>) -> (i32, i32) {
    %c0_i32 = arith.constant 0 : i32
    %c0_i32_0 = arith.constant 0 : i32
    return %arg1, %c0_i32 : i32, i32
  }
  func.func @transform_3(%arg0: i32, %arg1: i32, %arg2: memref<2x8xi32, #tpu.memory_space<smem>>) -> (i32, i32) {
    %c0_i32 = arith.constant 0 : i32
    %c0_i32_0 = arith.constant 0 : i32
    %c0_i32_1 = arith.constant 0 : i32
    return %c0_i32, %c0_i32_0 : i32, i32
  }
  func.func @transform_4(%arg0: i32, %arg1: i32, %arg2: memref<2x8xi32, #tpu.memory_space<smem>>) -> (i32, i32) {
    %c0_i32 = arith.constant 0 : i32
    %c0_i32_0 = arith.constant 0 : i32
    %c0_i32_1 = arith.constant 0 : i32
    return %c0_i32, %c0_i32_0 : i32, i32
  }
  func.func @transform_5(%arg0: i32, %arg1: i32, %arg2: memref<2x8xi32, #tpu.memory_space<smem>>) -> (i32, i32) {
    %c0_i32 = arith.constant 0 : i32
    %c0_i32_0 = arith.constant 0 : i32
    %c0_i32_1 = arith.constant 0 : i32
    return %c0_i32, %c0_i32_0 : i32, i32
  }
  func.func @transform_6(%arg0: i32, %arg1: i32, %arg2: memref<2x8xi32, #tpu.memory_space<smem>>) -> (i32, i32, i32) {
    %c0_i32 = arith.constant 0 : i32
    %c0_i32_0 = arith.constant 0 : i32
    return %arg0, %arg1, %c0_i32 : i32, i32, i32
  }
}

</mosaic_0001>

<bundles_post_ra>
// kernel: tpu_custom_call.1
= control target key start
LH: loop header
LB: loop body
LE: loop exit
PB: predicated region body
PF: predicated region fallthrough
CT: control target
= control target key end

     0   :  { %s822_s27 = smov [#allocation5]   ;;  %s1028_s0 = inlined_call_operand.vmem [shape: s32[2,8], index: 0, kind: input, shape index: {}]   ;;  %s1029_s1 = inlined_call_operand.vmem [shape: s32[2,8,1], index: 1, kind: input, shape index: {}]   ;;  %s1030_s2 = inlined_call_operand.hbm [shape: f32[32,32], index: 2, kind: input, shape index: {}]   ;;  %s1031_s3 = inlined_call_operand.vmem [shape: f32[16,32], index: 3, kind: input, shape index: {}]   ;;  %s1032_s4 = inlined_call_operand.vmem [shape: f32[2,32], index: 4, kind: input, shape index: {}]   ;;  %s1033_s5 = inlined_call_operand.vmem [shape: f32[1,32], index: 5, kind: input, shape index: {}]   ;;  %s1034_s6 = inlined_call_operand.vmem [shape: f32[1,32], index: 6, kind: input, shape index: {}]   ;;  %s1035_s7 = inlined_call_operand.hbm [shape: f32[2,8,32], index: 7, kind: output, shape index: {}]  }
   0x1   :  { %1041 = sst [smem:[#allocation21_spill]] %s1029_s1  ;;  %s13_s26 = sshll.u32 %s1028_s0, 4  ;;  %s14_s26 = int_to_ptr.vmem [resolvable:$true] %s13_s26 }
   0x2   :  { %16 = dma.vmem_to_smem %s14_s26, 32, %s822_s27, [#allocation4] }
   0x3   :  { %778 = dma.done.wait [#allocation4], 32 }
   0x4   :  { %779 = vsyncadd [#allocation4], 4294967264 }
   0x5   :  { %19 = sfence }
   0x6   :  { %20 = vsyncpa [#allocation7], 0 }
   0x7   :  { %22 = vsyncpa [#allocation7 + $0x1], 0  ;;  %s869_s28 = smov 0   ;;  %s871_s29 = smov 0  }
   0x8   :  { %s873_s30 = smov 0   ;;  %s875_s8 = smov 0  }
   0x9   :  { %s877_s9 = smov 0   ;;  %s879_s10 = smov 0  }
   0xa LB: > { %1042 = sst [smem:[#allocation16_spill]] %s800_s30  ;;  %s572_s0 = sadd.s32 4294967295, %s812_s10   ;;  %s812_s10 = sphi %s879_s10, %s28_s10   ;;  %s808_s9 = sphi %s877_s9, %s1057_s9   ;;  %s804_s8 = sphi %s875_s8, %s1056_s8   ;;  %s800_s30 = sphi %s873_s30, %s1055_s30   ;;  %s796_s29 = sphi %s871_s29, %s1059_s29   ;;  %s792_s28 = sphi %s869_s28, %s1058_s28  }
   0xb   : > { %1043 = sst [smem:[#allocation17_spill]] %s808_s9  ;;  %s573_s11 = sadd.s32 4294967294, %s812_s10  }
   0xc   : > { %s40_s12 = sadd.s32 1, %s808_s9  ;;  %s166_s13 = sadd.s32 1, %s800_s30 }
   0xd   : > { %p42_p0 = scmp.ge.s32.totalorder %s40_s12, 2  ;;  %p176_p1 = scmp.ne.s32.totalorder %s800_s30, %s796_s29 }
   0xe   : > { %p177_p2 = scmp.eq.s32.totalorder %s572_s0, 1  ;;  %p182_p3 = scmp.ne.s32.totalorder %s796_s29, %s792_s28 }
   0xf   : > { %s1061_s12 = smov (%p42_p0, %s40_s12), 0  ;;  %p183_p5 = scmp.eq.s32.totalorder %s573_s11, 1 }
  0x10   : > { %1044 = sst [smem:[#allocation18_spill]] %s1061_s12  ;;  %p909_p4 = por %p177_p2, %p176_p1 }
  0x11   : > { %s161_s15 = ssub.s32 %s808_s9, %s1061_s12  ;;  %p577_p6 = scmp.ge.s32.totalorder %s812_s10, 1 }
  0x12   : > { %p164_p7 = scmp.eq.s32.totalorder %s161_s15, 0  ;;  %p916_p8 = por %p183_p5, %p182_p3 }
  0x13   : > { %p227_p9 = scmp.lt.s32.totalorder %s812_s10, 3 }
  0x14   : > { %s1046_s16 = scalar_select %p916_p8, 1, 0 }
  0x15   : > { %s922_s17 = scalar_select %p164_p7, %s800_s30, %s166_s13  }
  0x16   : > { %1047 = sst [smem:[#allocation19_spill]] %s1046_s16  ;;  %p228_p10 = pnand %p577_p6, %p227_p9 }
  0x17   : > { %1048 = sst [smem:[#allocation20_spill]] %s922_s17  ;;  %s1036_s18 = sand.u32 (!%p228_p10), 1, %s796_s29  }
  0x18   : > { %231 = sbr.rel (%p228_p10) target bundleno = 486 (0x1e6), region = 40  ;;  %p261_p11 = scmp.lt.s32.totalorder (!%p228_p10), %s804_s8, 1 }
  0x19   : > { %s928_s19 = sshll.u32 (!%p228_p10), %s1036_s18, 3  ;;  %s1049_s1 = sld [smem:[#allocation21_spill]] (!%p228_p10) }
  0x1a   : > { %s937_s26 = smov (!%p228_p10), 0  }
  0x1d   : > { %s262_s20 = scalar_select %p261_p11, %s804_s8, 1 }
  0x1f   : > { %s579_s21 = sshll.u32 %s262_s20, 3 }
  0x20   : > { %s934_s24 = scalar_lea.vmem %s1049_s1, %s579_s21 }
  0x21 LB: >> { %p279_p12 = scmp.lt.s32.totalorder %s816_s26, 0  ;;  %s280_s27 = ssub.s32 0, %s816_s26  ;;  %s816_s26 = sphi %s937_s26, %s278_s26  }
  0x22   : >> { %s580_s0 = smin.u32 %s816_s26, %s280_s27  ;;  %p604_p13 = scmp.ge.s32.totalorder %s816_s26, 8 }
  0x23   : >> { %s282_s11 = sand.u32 7, %s580_s0  }
  0x24   : >> { %s283_s13 = ssub.s32 0, %s282_s11 }
  0x25   : >> { %s1063_s13 = smov (!%p279_p12, %s283_s13), %s282_s11 }
  0x26   : >> { %s946_s15 = scalar_lea.sflag [#allocation3], %s1063_s13 }
  0x27   : >> { %781 = dma.done.wait (%p604_p13), %s946_s15, 16 }
  0x28   : >> { %783 = vsyncadd (%p604_p13), %s946_s15, 4294967280  ;;  %s294_s20 = sshra.s32 %s816_s26, 7  ;;  %s299_s21 = sand.u32 127, %s816_s26 }
  0x29   : >> { %s296_s22 = sadd.s32 %s804_s8, %s294_s20  ;;  %s303_s0 = scalar_lea.vmem [#allocation2], %s816_s26 }
  0x2a   : >> { %s582_s23 = sshll.u32 %s296_s22, 7  ;;  %s314_s25 = sshll.u32 %s303_s0, 4  ;;  %s315_s25 = int_to_ptr.vmem [resolvable:$true] %s314_s25 }
  0x2b   : >> { %s300_s18 = sadd.s32 %s582_s23, %s299_s21  ;;  %s698_s20 = scalar_lea.hbm %s1030_s2, 32 }
  0x2c   : >> { %s301_s27 = sld [smem:[#allocation5 + %s300_s18]] }
  0x32   : >> { %s302_s13 = scalar_lea.hbm %s1030_s2, %s301_s27 }
  0x33   : >> { %s312_s12 = sshll.u32 %s302_s13, 4  ;;  %s313_s12 = int_to_ptr.hbm [resolvable:$true] %s312_s12 }
  0x34   : >> { %s694_s9 = sshra.s32 %s313_s12, 4  ;;  %s695_s9 = int_to_ptr.hbm [resolvable:$true] %s694_s9 }
  0x35   : >> { %s696_s17 = scalar_lea.hbm %s695_s9, 1  ;;  %p699_p1 = scmp.lt.s32.totalorder %s695_s9, %s1030_s2 }
  0x36   : >> { %p697_p0 = scmp.ne.s32.totalorder %s695_s9, %s696_s17  ;;  %p700_p2 = scmp.lt.s32.totalorder %s698_s20, %s696_s17 }
  0x38   : >> { %p701_p3 = por %p700_p2, %p699_p1 }
  0x3a   : >> { %p702_p5 = pnand %p701_p3, %p697_p0 }
  0x3c   : >> { %705 = shalt.err (!%p702_p5)  }
  0x3d   : >> { %s706_s1 = sshra.s32 %s315_s25, 4  ;;  %s823_s23 = smov [#allocation2]   ;;  %s707_s1 = int_to_ptr.vmem [resolvable:$true] %s706_s1 }
  0x3e   : >> { %s708_s18 = scalar_lea.vmem %s707_s1, 1  ;;  %s710_s27 = scalar_lea.vmem %s823_s23, 8 }
  0x3f   : >> { %p709_p6 = scmp.ne.s32.totalorder %s707_s1, %s708_s18  ;;  %p711_p7 = scmp.lt.s32.totalorder %s707_s1, [#allocation2] }
  0x40   : >> { %p712_p9 = scmp.lt.s32.totalorder %s710_s27, %s708_s18 }
  0x42   : >> { %p713_p10 = por %p712_p9, %p711_p7 }
  0x44   : >> { %p714_p11 = pnand %p713_p10, %p709_p6 }
  0x46   : >> { %717 = shalt.err (!%p714_p11)  }
  0x47   : >> { %317 = dma.hbm_to_vmem [thread:$0]  %s313_s12, 16, %s315_s25, %s946_s15 }
  0x48   : >> { %s278_s26 = sadd.s32 1, %s816_s26  }
  0x49   : >> { %p275_p12 = scmp.ge.s32.totalorder %s278_s26, 8  }
  0x4a   : > { %v318_v0 = vld [vmem:[%s934_s24] sm:$0xff] (%p275_p12)  ;;  %v824_v1 = vmov (%p275_p12), 0   ;;  %s818_s25 = smov (%p275_p12), 0  }
  0x4b   : > { %277 = sbr.rel (!%p275_p12) target bundleno = 33 (0x21), region = 112  ;;  %673 = vset.pattern.permute.xlu0 (%p275_p12), %v824_v1  ;;  %vm320_vm0 = vcmp.eq.s32.totalorder (%p275_p12), %v318_v0, 0  ;;  %vm330_vm1 = vcmp.eq.s32.totalorder (%p275_p12), %v318_v0, 1  ;;  %v674_v5 = vld [vmem:[%s1032_s4] ss:$0 sm:$0xff] (%p275_p12) }
  0x4c   : > { %v322_v2 = vsel (%p275_p12), %vm320_vm0, 1, %v824_v1  ;;  %v332_v3 = vsel (%p275_p12), %vm330_vm1, 1, %v824_v1  ;;  %v319_v6 = vld [vmem:[%s1031_s3] sm:$0xff] (%p275_p12) }
  0x4d   : > { %324 = vperm.xlu0 (%p275_p12), %673, %v322_v2   ;;  %v675_v8 = vld [vmem:[%s1032_s4 + $0x1] ss:$0 sm:$0xff] (%p275_p12) }
  0x55   : > { %334 = vperm.xlu0 %673, %v332_v3  }
  0xbf   : > { %v325_v4 = vpop.permute.xlu0 %324 }
  0xc0   : > { %vm326_vm2 = vcmp.eq.s32.totalorder %v325_v4, 1 }
  0xc1   : > { %v328_v7 = vsel %vm326_vm2, %v674_v5, 0.0 }
  0xc2   : > { %v329_v10 = vadd.f32 %v328_v7, %v319_v6 }
  0xc7   : > { %v335_v9 = vpop.permute.xlu0 %334 }
  0xc8   : > { %vm336_vm3 = vcmp.eq.s32.totalorder %v335_v9, 1 }
  0xc9   : > { %v338_v11 = vsel %vm336_vm3, %v675_v8, 0.0 }
  0xca   : > { %v339_v12 = vadd.f32 %v338_v11, %v329_v10 }
  0xcb LB: >> { %p346_p13 = scmp.lt.s32.totalorder %s820_s25, 0  ;;  %s347_s26 = ssub.s32 0, %s820_s25  ;;  %s820_s25 = sphi %s818_s25, %s345_s25  }
  0xcc   : >> { %s583_s15 = smin.u32 %s820_s25, %s347_s26 }
  0xcd   : >> { %s349_s0 = sand.u32 7, %s583_s15  }
  0xce   : >> { %s350_s11 = ssub.s32 0, %s349_s0 }
  0xcf   : >> { %s1065_s11 = smov (!%p346_p13, %s350_s11), %s349_s0 }
  0xd0   : >> { %s352_s13 = scalar_lea.sflag [#allocation3], %s1065_s11 }
  0xd1   : >> { %784 = dma.done.wait %s352_s13, 16 }
  0xd2   : >> { %785 = vsyncadd %s352_s13, 4294967280  ;;  %s345_s25 = sadd.s32 1, %s820_s25  }
  0xd3   : >> { %p342_p0 = scmp.ge.s32.totalorder %s345_s25, 8  }
  0xd4   : > { %v356_v13 = vld [vmem:[#allocation2] sm:$0xff] (%p342_p0)  ;;  %vm358_vm4 = vcmask (%p342_p0), 261120   ;;  %v825_v16 = vmov (%p342_p0), 32.0   ;;  %s585_s20 = sshll.u32 (%p342_p0), %s804_s8, 3  ;;  %s1050_s8 = scalar_lea.vmem (%p342_p0), [#allocation6], %s928_s19 }
  0xd5   : > { %344 = sbr.rel (!%p342_p0) target bundleno = 203 (0xcb), region = 123  ;;  %v357_v14 = vadd.f32 (%p342_p0), %v356_v13, %v339_v12  ;;  %678 = vrcp.f32 (%p342_p0), %v825_v16  ;;  %v676_v37 = vld [vmem:[%s1033_s5] ss:$0 sm:$0xff] (%p342_p0)  ;;  %s411_s23 = scalar_lea.hbm (%p342_p0), %s1035_s7, %s585_s20 }
  0xd6   : > { %v677_v40 = vld [vmem:[%s1034_s6] ss:$0 sm:$0xff] (%p342_p0)  ;;  %s413_s9 = sshll.u32 (%p342_p0), %s1050_s8, 4  ;;  %s415_s12 = sshll.u32 (%p342_p0), %s411_s23, 4  ;;  %s414_s9 = int_to_ptr.vmem [resolvable:$true] %s413_s9  ;;  %s416_s12 = int_to_ptr.hbm [resolvable:$true] %s415_s12 }
  0xd7   : > { %v359_v15 = vsel (%p342_p0), %vm358_vm4, %v357_v14, 0.0  ;;  %s1051_s16 = smov (%p342_p0), %s1050_s8  ;;  %s1052_s17 = sand.u32 (%p342_p0), 1, %s796_s29  }
  0xd8   : > { %360 = vadd.xlane.f32.xlu0 (%p342_p0), %v359_v15  ;;  %s400_s24 = scalar_lea.sflag (%p342_p0), [#allocation7], %s1052_s17  ;;  %s732_s25 = sshra.s32 (%p342_p0), %s416_s12, 4  ;;  %s733_s25 = int_to_ptr.hbm [resolvable:$true] %s732_s25 }
  0xd9   : > { %s734_s26 = scalar_lea.hbm (%p342_p0), %s733_s25, 8  ;;  %s738_s11 = scalar_lea.hbm (%p342_p0), %s1035_s7, 16 }
  0xda   : > { %p735_p1 = scmp.ne.s32.totalorder %s733_s25, %s734_s26  ;;  %p739_p5 = scmp.lt.s32.totalorder %s733_s25, %s1035_s7 }
  0xdb   : > { %v679_v17 = vpop.eup %678  ;;  %p740_p6 = scmp.lt.s32.totalorder %s738_s11, %s734_s26 }
  0xdc   : > { %v363_v18 = vmul.f32 32.0, %v679_v17  ;;  %vm367_vm5 = vweird.f32 %v679_v17  ;;  %p736_p2 = pnand %p735_p1, %p909_p4 }
  0xdd   : > { %p741_p7 = por %p740_p6, %p739_p5 }
  0xde   : > { %v364_v19 = vsub.f32 1.0, %v363_v18  ;;  %p737_p3 = pneg %p736_p2 }
  0xe0   : > { %v365_v20 = vmul.f32 %v679_v17, %v364_v19  ;;  %p742_p9 = pnand %p741_p7, %p737_p3 }
  0xe2   : > { %v366_v21 = vadd.f32 %v679_v17, %v365_v20 }
  0xe4   : > { %v368_v22 = vsel %vm367_vm5, %v679_v17, %v366_v21 }
 0x14b   : > { %v361_v23 = vpop.xlane.xlu0 %360 }
 0x14c   : > { %v369_v24 = vmul.f32 %v368_v22, %v361_v23 }
 0x14e   : > { %v370_v25 = vsub.f32 %v357_v14, %v369_v24 }
 0x150   : > { %v371_v26 = vmul.f32 %v370_v25, %v370_v25 }
 0x152   : > { %v372_v27 = vsel %vm358_vm4, %v371_v26, 0.0 }
 0x153   : > { %373 = vadd.xlane.f32.xlu0 %v372_v27 }
 0x1c6   : > { %v374_v28 = vpop.xlane.xlu0 %373 }
 0x1c7   : > { %v375_v29 = vmul.f32 %v374_v28, %v368_v22 }
 0x1c9   : > { %v376_v30 = vadd.f32 1e-05, %v375_v29 }
 0x1cb   : > { %680 = vrsqrt.f32 %v376_v30  ;;  %vm383_vm7 = vweird.f32 %v376_v30 }
 0x1d1   : > { %v681_v31 = vpop.eup %680 }
 0x1d2   : > { %v378_v32 = vmul.f32 %v681_v31, %v376_v30  ;;  %vm384_vm6 = vweird.f32 %v681_v31 }
 0x1d3   : > { %vm385_vm8 = vmor %vm383_vm7, %vm384_vm6 }
 0x1d4   : > { %v379_v33 = vmul.f32 %v681_v31, %v378_v32 }
 0x1d6   : > { %v380_v34 = vmul.f32 0.5, %v379_v33 }
 0x1d8   : > { %v381_v35 = vsub.f32 1.5, %v380_v34 }
 0x1da   : > { %v382_v36 = vmul.f32 %v681_v31, %v381_v35 }
 0x1dc   : > { %v386_v38 = vsel %vm385_vm8, %v681_v31, %v382_v36 }
 0x1dd   : > { %v387_v39 = vmul.f32 %v386_v38, %v370_v25 }
 0x1df   : > { %v392_v41 = vmul.f32 %v676_v37, %v387_v39 }
 0x1e1   : > { %v397_v42 = vadd.f32 %v677_v40, %v392_v41 }
 0x1e3   : > { %398 = vst.msk [vmem:[%s1051_s16] sm:$0xff] %vm358_vm4, %v397_v42 }
 0x1e4   : > { %745 = shalt.err (!%p742_p9)
}
 0x1e5   : > { %598 = dma.vmem_to_hbm [thread:$0]  (%p909_p4), %s414_s9, 128, %s416_s12, %s400_s24  }
 0x1e6 PF: > { %p605_p10 = scmp.ge.s32.totalorder %s812_s10, 2  ;;  %s427_s22 = sand.u32 1, %s792_s28  }
 0x1e7   : > { %s428_s21 = scalar_lea.sflag [#allocation7], %s427_s22 }
 0x1e8   : > { %p601_p11 = pnand %p605_p10, %p916_p8 }
 0x1ea   : > { %p602_p12 = pneg %p601_p11 }
 0x1ec   : > { %787 = dma.done.wait (%p602_p12), %s428_s21, 128  }
 0x1ed   : > { %789 = vsyncadd (%p602_p12), %s428_s21, 4294967168  ;;  %s28_s10 = sadd.s32 1, %s812_s10   ;;  %s1054_s1 = sld [smem:[#allocation16_spill]] }
 0x1ee   : > { %p25_p13 = scmp.ge.s32.totalorder %s28_s10, 4   ;;  %s1055_s30 = sld [smem:[#allocation20_spill]] }
 0x1ef   : > { %s1056_s8 = sld [smem:[#allocation17_spill]]  ;;  %s1058_s28 = smov %s796_s29 }
 0x1f0   : > { %s1057_s9 = sld [smem:[#allocation18_spill]]  ;;  %27 = sbr.rel (!%p25_p13) target bundleno = 10 (0xa), region = 134 }
 0x1f3   : > { %s1059_s29 = smov %s1054_s1 }
 0x1f5   :  { %434 = vsyncpa [#allocation7], 1 }
 0x1f6   :  { %436 = vsyncpa [#allocation7 + $0x1], 1 }
 0x1f7   :  { %437 = vsyncmov [#allocation3] }
 0x1fa   :  { %s438_s14 = vpop.sfrf %437 }
 0x1fb   :  { %p588_p4 = scmp.ne.s32.totalorder %s438_s14, 0 }
 0x1fd   :  { %442 = shalt.err (%p588_p4)  }
 0x1fe   :  { %444 = vsyncmov [#allocation3 + $0x1] }
 0x201   :  { %s445_s18 = vpop.sfrf %444 }
 0x202   :  { %p589_p8 = scmp.ne.s32.totalorder %s445_s18, 0 }
 0x204   :  { %449 = shalt.err (%p589_p8)  }
 0x205   :  { %451 = vsyncmov [#allocation3 + $0x2] }
 0x208   :  { %s452_s23 = vpop.sfrf %451 }
 0x209   :  { %p590_p0 = scmp.ne.s32.totalorder %s452_s23, 0 }
 0x20b   :  { %456 = shalt.err (%p590_p0)  }
 0x20c   :  { %458 = vsyncmov [#allocation3 + $0x3] }
 0x20f   :  { %s459_s27 = vpop.sfrf %458 }
 0x210   :  { %p591_p1 = scmp.ne.s32.totalorder %s459_s27, 0 }
 0x212   :  { %463 = shalt.err (%p591_p1)  }
 0x213   :  { %465 = vsyncmov [#allocation3 + $0x4] }
 0x216   :  { %s466_s10 = vpop.sfrf %465 }
 0x217   :  { %p592_p2 = scmp.ne.s32.totalorder %s466_s10, 0 }
 0x219   :  { %470 = shalt.err (%p592_p2)  }
 0x21a   :  { %472 = vsyncmov [#allocation3 + $0x5] }
 0x21d   :  { %s473_s2 = vpop.sfrf %472 }
 0x21e   :  { %p593_p3 = scmp.ne.s32.totalorder %s473_s2, 0 }
 0x220   :  { %477 = shalt.err (%p593_p3)  }
 0x221   :  { %479 = vsyncmov [#allocation3 + $0x6] }
 0x224   :  { %s480_s3 = vpop.sfrf %479 }
 0x225   :  { %p594_p5 = scmp.ne.s32.totalorder %s480_s3, 0 }
 0x227   :  { %484 = shalt.err (%p594_p5)  }
 0x228   :  { %486 = vsyncmov [#allocation3 + $0x7] }
 0x22b   :  { %s487_s4 = vpop.sfrf %486 }
 0x22c   :  { %p595_p6 = scmp.ne.s32.totalorder %s487_s4, 0 }
 0x22e   :  { %491 = shalt.err (%p595_p6)  }

</bundles_post_ra>
